<compile_context>
chip_gen: v5e
topology: v5e:2x2
jax: 0.10.0
libtpu: 0.0.40
codegen_flags: <defaults>
</compile_context>

<pallas_src>
import functools
import numpy as np
import jax
import jax.numpy as jnp
from jax.experimental import pallas as pl
from jax.experimental.pallas import tpu as pltpu

ENCODER_REGULAR_VTH = 0.999
NEURON_VTH = 0.5
NEURON_CDECAY = 0.5      # 1/2
NEURON_VDECAY = 0.75     # 3/4


def _round_up(x, m):
    return ((x + m - 1) // m) * m


def _spiking_actor_kernel(spike_ts, en_pop_dim,
                          obs_ref, mean_ref, nhiv_ref,
                          w1_ref, b1_ref, w2_ref, b2_ref,
                          wout_ref, bout_ref, wdec_ref, bdec_ref,
                          mu_ref, rep_scratch):
    f32 = jnp.float32
    bf16 = jnp.bfloat16

    TB = obs_ref.shape[0]
    obs_dim = obs_ref.shape[1]
    h1 = w1_ref.shape[1]
    h2 = w2_ref.shape[1]
    out_pop = wout_ref.shape[1]

    # --- On-chip population replication (raw obs DMA is en_pop_dim x smaller than obs_rep). ---
    obs = obs_ref[...]                                       # (TB, obs_dim)
    for i in range(obs_dim):                                 # static python loop, tiny
        rep_scratch[:, i * en_pop_dim:(i + 1) * en_pop_dim] = jnp.broadcast_to(
            obs[:, i:i + 1], (TB, en_pop_dim))
    obs_rep = rep_scratch[...]                               # (TB, obs_dim*en_pop_dim)

    # Gaussian receptive fields: exp(-(x-mean)^2 / (2 std^2)) with -0.5/std^2 precomputed (no divide).
    diff = obs_rep - mean_ref[...]
    pop_act = jnp.exp(diff * diff * nhiv_ref[...])

    # --- Regular-spike encoder train (VPU only); batch the timesteps along sublanes. ---
    enc_volt = jnp.zeros_like(pop_act)
    spikes = []
    for _ in range(spike_ts):                                # small static int -> unrolled
        enc_volt = enc_volt + pop_act
        sp = (enc_volt > ENCODER_REGULAR_VTH).astype(f32)
        enc_volt = enc_volt - sp * ENCODER_REGULAR_VTH
        spikes.append(sp)
    in_spike_all = jnp.concatenate(spikes, axis=0)           # (spike_ts*TB, in_pop)

    # --- Layer 1: one batched MXU pass for all timesteps, then a pure-VPU recurrence. ---
    x1_all = jnp.dot(in_spike_all.astype(bf16), w1_ref[...],
                     preferred_element_type=f32) + b1_ref[...]
    c1 = jnp.zeros((TB, h1), f32); v1 = jnp.zeros((TB, h1), f32); s1 = jnp.zeros((TB, h1), f32)
    s1_list = []
    for t in range(spike_ts):
        c1 = c1 * NEURON_CDECAY + x1_all[t * TB:(t + 1) * TB, :]
        v1 = v1 * NEURON_VDECAY * (1.0 - s1) + c1
        s1 = (v1 > NEURON_VTH).astype(f32)
        s1_list.append(s1)
    s1_all = jnp.concatenate(s1_list, axis=0)                # (spike_ts*TB, h1)

    # --- Layer 2: same pattern. ---
    x2_all = jnp.dot(s1_all.astype(bf16), w2_ref[...],
                     preferred_element_type=f32) + b2_ref[...]
    c2 = jnp.zeros((TB, h2), f32); v2 = jnp.zeros((TB, h2), f32); s2 = jnp.zeros((TB, h2), f32)
    s2_list = []
    for t in range(spike_ts):
        c2 = c2 * NEURON_CDECAY + x2_all[t * TB:(t + 1) * TB, :]
        v2 = v2 * NEURON_VDECAY * (1.0 - s2) + c2
        s2 = (v2 > NEURON_VTH).astype(f32)
        s2_list.append(s2)
    s2_all = jnp.concatenate(s2_list, axis=0)                # (spike_ts*TB, h2)

    # --- Output population layer: batched projection + VPU recurrence + spike-count accumulation. ---
    xo_all = jnp.dot(s2_all.astype(bf16), wout_ref[...],
                     preferred_element_type=f32) + bout_ref[...]
    co = jnp.zeros((TB, out_pop), f32); vo = jnp.zeros((TB, out_pop), f32)
    so = jnp.zeros((TB, out_pop), f32)
    out_cnt = jnp.zeros((TB, out_pop), f32)                  # integer-valued spike count
    for t in range(spike_ts):
        co = co * NEURON_CDECAY + xo_all[t * TB:(t + 1) * TB, :]
        vo = vo * NEURON_VDECAY * (1.0 - so) + co
        so = (vo > NEURON_VTH).astype(f32)
        out_cnt = out_cnt + so

    # --- PopSpikeDecoder: grouped conv1d == block-diagonal matmul; output lane-padded to 128 so the
    #     store is an unmasked lane-dense vst.  Matmul runs on the bf16-exact integer count, the
    #     1/spike_ts average is folded in afterwards (linear). ---
    mu_ref[...] = jnp.tanh(
        jnp.dot(out_cnt.astype(bf16), wdec_ref[...], preferred_element_type=f32)
        * (1.0 / float(spike_ts)) + bdec_ref[...])


def spiking_actor_forward(obs, params, *, en_pop_dim, act_dim, spike_ts):
    B, obs_dim = obs.shape
    in_pop = params["mean"].shape[1]
    h1 = params["w1_bf16"].shape[1]
    h2 = params["w2_bf16"].shape[1]
    out_pop = params["wout_bf16"].shape[1]
    n_pad = params["wdec_pad_bf16"].shape[1]                 # lane-padded decoder width (>=128)

    # Batch tiling: always >=2 tiles for B <= 128 so both v7x TensorCores get work; tile at 128 rows
    # for larger batches.  TODO(synk): TB=256 for very large B once profitable.
    if B <= 128:
        TB = _round_up(B, 16) // 2                           # multiple of 8, exactly 2 tiles
        B_pad = 2 * TB
    else:
        TB = 128
        B_pad = _round_up(B, TB)
    nb = B_pad // TB

    obs_p = jnp.zeros((B_pad, obs_dim), jnp.float32).at[:B].set(obs)

    kernel = functools.partial(_spiking_actor_kernel, spike_ts, en_pop_dim)

    def const_spec(shape):
        # TODO(synk): pipeline_mode=pl.Buffered(1) to single-buffer these constants (and an explicit
        # vmem_limit_bytes) once hidden sizes grow — matters first on v7x's 64 MiB VMEM.
        return pl.BlockSpec(shape, lambda i: (0, 0))

    mu_pad = pl.pallas_call(
        kernel,
        out_shape=jax.ShapeDtypeStruct((B_pad, n_pad), jnp.float32),
        grid=(nb,),
        in_specs=[
            pl.BlockSpec((TB, obs_dim), lambda i: (i, 0)),   # raw obs (only batch-scaling input)
            const_spec((1, in_pop)),                         # mean
            const_spec((1, in_pop)),                         # -0.5 / std^2
            const_spec((in_pop, h1)),                        # w1 (bf16)
            const_spec((1, h1)),                             # b1
            const_spec((h1, h2)),                            # w2 (bf16)
            const_spec((1, h2)),                             # b2
            const_spec((h2, out_pop)),                       # wout (bf16)
            const_spec((1, out_pop)),                        # bout
            const_spec((out_pop, n_pad)),                    # wdec block-diag, lane-padded (bf16)
            const_spec((1, n_pad)),                          # bdec lane-padded
        ],
        out_specs=pl.BlockSpec((TB, n_pad), lambda i: (i, 0)),
        scratch_shapes=[pltpu.VMEM((TB, in_pop), jnp.float32)],   # on-chip obs replication buffer
        # TODO(synk): try pltpu.CORE_PARALLEL here on v7x; plain "parallel" is safe on all gens.
        compiler_params=pltpu.CompilerParams(dimension_semantics=("parallel",)),
    )(obs_p, params["mean"], params["neg_half_inv_var"],
      params["w1_bf16"], params["b1"], params["w2_bf16"], params["b2"],
      params["wout_bf16"], params["bout"], params["wdec_pad_bf16"], params["bdec_pad"])

    mu = mu_pad[:B, :act_dim]
    # SpikingActor.forward returns (mu, None); the log_std parameter is unused in forward.
    return mu, None


def _reference_forward(obs, params, *, en_pop_dim, act_dim, spike_ts):
    """Pure-JAX reference with PyTorch per-step ordering.  It uses the SAME bf16 weights at the
    matmul inputs as the kernel's MXU path (spike operands are exactly 0/1 so only the weights are
    quantized), which keeps the 1e-5 parity check meaningful."""
    f32, bf16 = jnp.float32, jnp.bfloat16
    obs_rep = jnp.repeat(obs, en_pop_dim, axis=1)
    diff = obs_rep - params["mean"]
    pop_act = jnp.exp(diff * diff * params["neg_half_inv_var"])

    B = obs.shape[0]
    h1 = params["w1_bf16"].shape[1]; h2 = params["w2_bf16"].shape[1]
    op = params["wout_bf16"].shape[1]
    enc_volt = jnp.zeros_like(pop_act)
    c1 = v1 = s1 = jnp.zeros((B, h1), f32)
    c2 = v2 = s2 = jnp.zeros((B, h2), f32)
    co = vo = so = jnp.zeros((B, op), f32)
    out_cnt = jnp.zeros((B, op), f32)

    def lif(spike_in, w_bf16, b, c, v, s):
        x = jnp.dot(spike_in.astype(bf16), w_bf16, preferred_element_type=f32) + b
        c = c * NEURON_CDECAY + x
        v = v * NEURON_VDECAY * (1.0 - s) + c
        s = (v > NEURON_VTH).astype(f32)
        return c, v, s

    for _ in range(spike_ts):
        enc_volt = enc_volt + pop_act
        in_spike = (enc_volt > ENCODER_REGULAR_VTH).astype(f32)
        enc_volt = enc_volt - in_spike * ENCODER_REGULAR_VTH
        c1, v1, s1 = lif(in_spike, params["w1_bf16"], params["b1"], c1, v1, s1)
        c2, v2, s2 = lif(s1, params["w2_bf16"], params["b2"], c2, v2, s2)
        co, vo, so = lif(s2, params["wout_bf16"], params["bout"], co, vo, so)
        out_cnt = out_cnt + so

    dec = jnp.dot(out_cnt.astype(bf16), params["wdec_pad_bf16"],
                  preferred_element_type=f32) * (1.0 / float(spike_ts)) + params["bdec_pad"]
    return jnp.tanh(dec)[:, :act_dim]


def make_params(key, obs_dim, act_dim, en_pop_dim, de_pop_dim, hidden_sizes, mean_range, std):
    in_pop_dim = obs_dim * en_pop_dim
    out_pop_dim = act_dim * de_pop_dim
    h1, h2 = hidden_sizes
    keys = jax.random.split(key, 8)

    # Encoder Gaussian receptive fields: evenly spaced means, constant std.
    mean_1d = jnp.tile(jnp.linspace(mean_range[0], mean_range[1], en_pop_dim, dtype=jnp.float32),
                       obs_dim)
    std_1d = jnp.full((in_pop_dim,), std, dtype=jnp.float32)
    neg_half_inv_var = (-0.5) / (std_1d * std_1d)            # precomputed: no vector divide in-kernel

    def linear(kw, kb, fan_in, fan_out):
        bound = 1.0 / np.sqrt(fan_in)
        w = jax.random.uniform(kw, (fan_in, fan_out), jnp.float32, -bound, bound)  # (in, out)
        b = jax.random.uniform(kb, (1, fan_out), jnp.float32, -bound, bound)
        return w, b

    w1, b1 = linear(keys[0], keys[1], in_pop_dim, h1)
    w2, b2 = linear(keys[2], keys[3], h1, h2)
    wout, bout = linear(keys[4], keys[5], h2, out_pop_dim)

    # Decoder grouped Conv1d(act_dim, act_dim, de_pop_dim, groups=act_dim) -> block-diagonal matmul,
    # zero-padded along output lanes to a multiple of 128 for a lane-dense kernel store.
    n_pad = _round_up(max(act_dim, 128), 128)
    dbound = 1.0 / np.sqrt(de_pop_dim)
    wdec = jax.random.uniform(keys[6], (act_dim, de_pop_dim), jnp.float32, -dbound, dbound)
    bdec = jax.random.uniform(keys[7], (1, act_dim), jnp.float32, -dbound, dbound)
    wdec_pad = jnp.zeros((out_pop_dim, n_pad), dtype=jnp.float32)
    for a in range(act_dim):
        wdec_pad = wdec_pad.at[a * de_pop_dim:(a + 1) * de_pop_dim, a].set(wdec[a])
    bdec_pad = jnp.zeros((1, n_pad), dtype=jnp.float32).at[:, :act_dim].set(bdec)

    return {
        "mean": mean_1d.reshape(1, in_pop_dim),
        "neg_half_inv_var": neg_half_inv_var.reshape(1, in_pop_dim),
        # f32 master weights (module parameters) + bf16 copies for the MXU path.
        "w1": w1, "b1": b1, "w2": w2, "b2": b2, "wout": wout, "bout": bout,
        "w1_bf16": w1.astype(jnp.bfloat16),
        "w2_bf16": w2.astype(jnp.bfloat16),
        "wout_bf16": wout.astype(jnp.bfloat16),
        "wdec_pad": wdec_pad, "bdec_pad": bdec_pad,
        "wdec_pad_bf16": wdec_pad.astype(jnp.bfloat16),
    }


if __name__ == "__main__":
    # Small config consistent with the module's constructor.
    obs_dim, act_dim = 4, 2
    en_pop_dim, de_pop_dim = 8, 8
    hidden_sizes = (32, 32)
    mean_range = (-3.0, 3.0)
    std = 1.0
    spike_ts = 5
    batch = 2

    key = jax.random.PRNGKey(0)
    k_obs, k_params = jax.random.split(key)
    obs = jax.random.normal(k_obs, (batch, obs_dim), dtype=jnp.float32)
    params = make_params(k_params, obs_dim, act_dim, en_pop_dim, de_pop_dim,
                         hidden_sizes, mean_range, std)

    mu, log_std_placeholder = spiking_actor_forward(
        obs, params, en_pop_dim=en_pop_dim, act_dim=act_dim, spike_ts=spike_ts)
    mu = jax.block_until_ready(mu)

    mu_ref = _reference_forward(obs, params, en_pop_dim=en_pop_dim, act_dim=act_dim,
                                spike_ts=spike_ts)
    np.testing.assert_allclose(np.asarray(mu), np.asarray(mu_ref), rtol=1e-5, atol=1e-5)
    assert mu.shape == (batch, act_dim) and mu.dtype == jnp.float32
    assert log_std_placeholder is None

    print("KERNEL_OK")
</pallas_src>

<mosaic_0001>
module attributes {stable_mosaic.version = 11 : i64} {
  func.func @_spiking_actor_kernel(%arg0: i32, %arg1: memref<8x4xf32, #tpu.memory_space<vmem>>, %arg2: memref<1x32xf32, #tpu.memory_space<vmem>>, %arg3: memref<1x32xf32, #tpu.memory_space<vmem>>, %arg4: memref<32x32xbf16, #tpu.memory_space<vmem>>, %arg5: memref<1x32xf32, #tpu.memory_space<vmem>>, %arg6: memref<32x32xbf16, #tpu.memory_space<vmem>>, %arg7: memref<1x32xf32, #tpu.memory_space<vmem>>, %arg8: memref<32x16xbf16, #tpu.memory_space<vmem>>, %arg9: memref<1x16xf32, #tpu.memory_space<vmem>>, %arg10: memref<16x128xbf16, #tpu.memory_space<vmem>>, %arg11: memref<1x128xf32, #tpu.memory_space<vmem>>, %arg12: memref<8x128xf32, #tpu.memory_space<vmem>>, %arg13: memref<8x32xf32, #tpu.memory_space<vmem>>) attributes {dimension_semantics = [#tpu.dimension_semantics<parallel>], iteration_bounds = array<i64: 2>, scalar_prefetch = 0 : i64, scratch_operands = 1 : i64, tpu.core_type = #tpu.core_type<tc>, window_params = [{transform_indices = @transform_0, window_bounds = array<i64: 8, 4>}, {pipeline_mode = #tpu.pipeline_mode<synchronous>, transform_indices = @transform_1, window_bounds = array<i64: 1, 32>}, {pipeline_mode = #tpu.pipeline_mode<synchronous>, transform_indices = @transform_2, window_bounds = array<i64: 1, 32>}, {pipeline_mode = #tpu.pipeline_mode<synchronous>, transform_indices = @transform_3, window_bounds = array<i64: 32, 32>}, {pipeline_mode = #tpu.pipeline_mode<synchronous>, transform_indices = @transform_4, window_bounds = array<i64: 1, 32>}, {pipeline_mode = #tpu.pipeline_mode<synchronous>, transform_indices = @transform_5, window_bounds = array<i64: 32, 32>}, {pipeline_mode = #tpu.pipeline_mode<synchronous>, transform_indices = @transform_6, window_bounds = array<i64: 1, 32>}, {pipeline_mode = #tpu.pipeline_mode<synchronous>, transform_indices = @transform_7, window_bounds = array<i64: 32, 16>}, {pipeline_mode = #tpu.pipeline_mode<synchronous>, transform_indices = @transform_8, window_bounds = array<i64: 1, 16>}, {pipeline_mode = #tpu.pipeline_mode<synchronous>, transform_indices = @transform_9, window_bounds = array<i64: 16, 128>}, {pipeline_mode = #tpu.pipeline_mode<synchronous>, transform_indices = @transform_10, window_bounds = array<i64: 1, 128>}, {transform_indices = @transform_11, window_bounds = array<i64: 8, 128>}]} {
    %c0 = arith.constant 0 : index
    %c0_0 = arith.constant 0 : index
    %0 = vector.load %arg1[%c0, %c0_0] : memref<8x4xf32, #tpu.memory_space<vmem>>, vector<8x4xf32>
    %1 = vector.extract_strided_slice %0 {offsets = [0, 0], sizes = [8, 1], strides = [1, 1]} : vector<8x4xf32> to vector<8x1xf32>
    %2 = vector.shape_cast %1 : vector<8x1xf32> to vector<8x1xf32>
    %3 = vector.broadcast %2 : vector<8x1xf32> to vector<8x8xf32>
    %c0_1 = arith.constant 0 : index
    %c0_2 = arith.constant 0 : index
    %4 = vector.load %arg13[%c0_1, %c0_2] : memref<8x32xf32, #tpu.memory_space<vmem>>, vector<8x8xf32>
    tpu.vector_store %arg13[%c0_1, %c0_2], %3 {strides = array<i32>} : memref<8x32xf32, #tpu.memory_space<vmem>>, vector<8x8xf32>,
    %5 = vector.extract_strided_slice %0 {offsets = [0, 1], sizes = [8, 1], strides = [1, 1]} : vector<8x4xf32> to vector<8x1xf32>
    %6 = vector.shape_cast %5 : vector<8x1xf32> to vector<8x1xf32>
    %7 = vector.broadcast %6 : vector<8x1xf32> to vector<8x8xf32>
    %c0_3 = arith.constant 0 : index
    %c8 = arith.constant 8 : index
    %8 = vector.load %arg13[%c0_3, %c8] : memref<8x32xf32, #tpu.memory_space<vmem>>, vector<8x8xf32>
    tpu.vector_store %arg13[%c0_3, %c8], %7 {strides = array<i32>} : memref<8x32xf32, #tpu.memory_space<vmem>>, vector<8x8xf32>,
    %9 = vector.extract_strided_slice %0 {offsets = [0, 2], sizes = [8, 1], strides = [1, 1]} : vector<8x4xf32> to vector<8x1xf32>
    %10 = vector.shape_cast %9 : vector<8x1xf32> to vector<8x1xf32>
    %11 = vector.broadcast %10 : vector<8x1xf32> to vector<8x8xf32>
    %c0_4 = arith.constant 0 : index
    %c16 = arith.constant 16 : index
    %12 = vector.load %arg13[%c0_4, %c16] : memref<8x32xf32, #tpu.memory_space<vmem>>, vector<8x8xf32>
    tpu.vector_store %arg13[%c0_4, %c16], %11 {strides = array<i32>} : memref<8x32xf32, #tpu.memory_space<vmem>>, vector<8x8xf32>,
    %13 = vector.extract_strided_slice %0 {offsets = [0, 3], sizes = [8, 1], strides = [1, 1]} : vector<8x4xf32> to vector<8x1xf32>
    %14 = vector.shape_cast %13 : vector<8x1xf32> to vector<8x1xf32>
    %15 = vector.broadcast %14 : vector<8x1xf32> to vector<8x8xf32>
    %c0_5 = arith.constant 0 : index
    %c24 = arith.constant 24 : index
    %16 = vector.load %arg13[%c0_5, %c24] : memref<8x32xf32, #tpu.memory_space<vmem>>, vector<8x8xf32>
    tpu.vector_store %arg13[%c0_5, %c24], %15 {strides = array<i32>} : memref<8x32xf32, #tpu.memory_space<vmem>>, vector<8x8xf32>,
    %c0_6 = arith.constant 0 : index
    %c0_7 = arith.constant 0 : index
    %17 = vector.load %arg13[%c0_6, %c0_7] : memref<8x32xf32, #tpu.memory_space<vmem>>, vector<8x32xf32>
    %c0_8 = arith.constant 0 : index
    %c0_9 = arith.constant 0 : index
    %18 = vector.load %arg2[%c0_8, %c0_9] : memref<1x32xf32, #tpu.memory_space<vmem>>, vector<1x32xf32>
    %19 = vector.broadcast %18 : vector<1x32xf32> to vector<8x32xf32>
    %20 = arith.subf %17, %19 : vector<8x32xf32>
    %21 = arith.mulf %20, %20 : vector<8x32xf32>
    %c0_10 = arith.constant 0 : index
    %c0_11 = arith.constant 0 : index
    %22 = vector.load %arg3[%c0_10, %c0_11] : memref<1x32xf32, #tpu.memory_space<vmem>>, vector<1x32xf32>
    %23 = vector.broadcast %22 : vector<1x32xf32> to vector<8x32xf32>
    %24 = arith.mulf %21, %23 : vector<8x32xf32>
    %25 = math.exp %24 : vector<8x32xf32>
    %cst = arith.constant 0.000000e+00 : f32
    %26 = vector.broadcast %cst : f32 to vector<8x32xf32>
    %27 = arith.addf %26, %25 : vector<8x32xf32>
    %cst_12 = arith.constant 9.990000e-01 : f32
    %28 = vector.broadcast %cst_12 : f32 to vector<8x32xf32>
    %29 = arith.cmpf ogt, %27, %28 : vector<8x32xf32>
    %30 = arith.extui %29 : vector<8x32xi1> to vector<8x32xi32>
    %31 = arith.sitofp %30 : vector<8x32xi32> to vector<8x32xf32>
    %cst_13 = arith.constant 9.990000e-01 : f32
    %32 = vector.broadcast %cst_13 : f32 to vector<8x32xf32>
    %33 = arith.mulf %31, %32 : vector<8x32xf32>
    %34 = arith.subf %27, %33 : vector<8x32xf32>
    %35 = arith.addf %34, %25 : vector<8x32xf32>
    %cst_14 = arith.constant 9.990000e-01 : f32
    %36 = vector.broadcast %cst_14 : f32 to vector<8x32xf32>
    %37 = arith.cmpf ogt, %35, %36 : vector<8x32xf32>
    %38 = arith.extui %37 : vector<8x32xi1> to vector<8x32xi32>
    %39 = arith.sitofp %38 : vector<8x32xi32> to vector<8x32xf32>
    %cst_15 = arith.constant 9.990000e-01 : f32
    %40 = vector.broadcast %cst_15 : f32 to vector<8x32xf32>
    %41 = arith.mulf %39, %40 : vector<8x32xf32>
    %42 = arith.subf %35, %41 : vector<8x32xf32>
    %43 = arith.addf %42, %25 : vector<8x32xf32>
    %cst_16 = arith.constant 9.990000e-01 : f32
    %44 = vector.broadcast %cst_16 : f32 to vector<8x32xf32>
    %45 = arith.cmpf ogt, %43, %44 : vector<8x32xf32>
    %46 = arith.extui %45 : vector<8x32xi1> to vector<8x32xi32>
    %47 = arith.sitofp %46 : vector<8x32xi32> to vector<8x32xf32>
    %cst_17 = arith.constant 9.990000e-01 : f32
    %48 = vector.broadcast %cst_17 : f32 to vector<8x32xf32>
    %49 = arith.mulf %47, %48 : vector<8x32xf32>
    %50 = arith.subf %43, %49 : vector<8x32xf32>
    %51 = arith.addf %50, %25 : vector<8x32xf32>
    %cst_18 = arith.constant 9.990000e-01 : f32
    %52 = vector.broadcast %cst_18 : f32 to vector<8x32xf32>
    %53 = arith.cmpf ogt, %51, %52 : vector<8x32xf32>
    %54 = arith.extui %53 : vector<8x32xi1> to vector<8x32xi32>
    %55 = arith.sitofp %54 : vector<8x32xi32> to vector<8x32xf32>
    %cst_19 = arith.constant 9.990000e-01 : f32
    %56 = vector.broadcast %cst_19 : f32 to vector<8x32xf32>
    %57 = arith.mulf %55, %56 : vector<8x32xf32>
    %58 = arith.subf %51, %57 : vector<8x32xf32>
    %59 = arith.addf %58, %25 : vector<8x32xf32>
    %cst_20 = arith.constant 9.990000e-01 : f32
    %60 = vector.broadcast %cst_20 : f32 to vector<8x32xf32>
    %61 = arith.cmpf ogt, %59, %60 : vector<8x32xf32>
    %62 = arith.extui %61 : vector<8x32xi1> to vector<8x32xi32>
    %63 = arith.sitofp %62 : vector<8x32xi32> to vector<8x32xf32>
    %64 = tpu.concatenate %31, %39, %47, %55, %63 in 0 : vector<8x32xf32>, vector<8x32xf32>, vector<8x32xf32>, vector<8x32xf32>, vector<8x32xf32> -> vector<40x32xf32>
    %65 = arith.truncf %64 : vector<40x32xf32> to vector<40x32xbf16>
    %c0_21 = arith.constant 0 : index
    %c0_22 = arith.constant 0 : index
    %66 = vector.load %arg4[%c0_21, %c0_22] : memref<32x32xbf16, #tpu.memory_space<vmem>>, vector<32x32xbf16>
    %cst_23 = arith.constant dense<0.000000e+00> : vector<40x32xf32>
    %67 = tpu.matmul %65, %66, %cst_23 {dimension_numbers = #tpu.dot_dimension_numbers<[1], [0], [0], [1], [0, 0, 1, 1], [], []>} : vector<40x32xbf16>, vector<32x32xbf16>, vector<40x32xf32> -> vector<40x32xf32>
    %c0_24 = arith.constant 0 : index
    %c0_25 = arith.constant 0 : index
    %68 = vector.load %arg5[%c0_24, %c0_25] : memref<1x32xf32, #tpu.memory_space<vmem>>, vector<1x32xf32>
    %69 = vector.broadcast %68 : vector<1x32xf32> to vector<40x32xf32>
    %70 = arith.addf %67, %69 : vector<40x32xf32>
    %cst_26 = arith.constant 0.000000e+00 : f32
    %71 = vector.broadcast %cst_26 : f32 to vector<8x32xf32>
    %cst_27 = arith.constant 0.000000e+00 : f32
    %72 = vector.broadcast %cst_27 : f32 to vector<8x32xf32>
    %cst_28 = arith.constant 0.000000e+00 : f32
    %73 = vector.broadcast %cst_28 : f32 to vector<8x32xf32>
    %cst_29 = arith.constant 5.000000e-01 : f32
    %74 = vector.broadcast %cst_29 : f32 to vector<8x32xf32>
    %75 = arith.mulf %71, %74 : vector<8x32xf32>
    %76 = vector.extract_strided_slice %70 {offsets = [0, 0], sizes = [8, 32], strides = [1, 1]} : vector<40x32xf32> to vector<8x32xf32>
    %77 = arith.addf %75, %76 : vector<8x32xf32>
    %cst_30 = arith.constant 7.500000e-01 : f32
    %78 = vector.broadcast %cst_30 : f32 to vector<8x32xf32>
    %79 = arith.mulf %72, %78 : vector<8x32xf32>
    %cst_31 = arith.constant 1.000000e+00 : f32
    %80 = vector.broadcast %cst_31 : f32 to vector<8x32xf32>
    %81 = arith.subf %80, %73 : vector<8x32xf32>
    %82 = arith.mulf %79, %81 : vector<8x32xf32>
    %83 = arith.addf %82, %77 : vector<8x32xf32>
    %cst_32 = arith.constant 5.000000e-01 : f32
    %84 = vector.broadcast %cst_32 : f32 to vector<8x32xf32>
    %85 = arith.cmpf ogt, %83, %84 : vector<8x32xf32>
    %86 = arith.extui %85 : vector<8x32xi1> to vector<8x32xi32>
    %87 = arith.sitofp %86 : vector<8x32xi32> to vector<8x32xf32>
    %cst_33 = arith.constant 5.000000e-01 : f32
    %88 = vector.broadcast %cst_33 : f32 to vector<8x32xf32>
    %89 = arith.mulf %77, %88 : vector<8x32xf32>
    %90 = vector.extract_strided_slice %70 {offsets = [8, 0], sizes = [8, 32], strides = [1, 1]} : vector<40x32xf32> to vector<8x32xf32>
    %91 = arith.addf %89, %90 : vector<8x32xf32>
    %cst_34 = arith.constant 7.500000e-01 : f32
    %92 = vector.broadcast %cst_34 : f32 to vector<8x32xf32>
    %93 = arith.mulf %83, %92 : vector<8x32xf32>
    %cst_35 = arith.constant 1.000000e+00 : f32
    %94 = vector.broadcast %cst_35 : f32 to vector<8x32xf32>
    %95 = arith.subf %94, %87 : vector<8x32xf32>
    %96 = arith.mulf %93, %95 : vector<8x32xf32>
    %97 = arith.addf %96, %91 : vector<8x32xf32>
    %cst_36 = arith.constant 5.000000e-01 : f32
    %98 = vector.broadcast %cst_36 : f32 to vector<8x32xf32>
    %99 = arith.cmpf ogt, %97, %98 : vector<8x32xf32>
    %100 = arith.extui %99 : vector<8x32xi1> to vector<8x32xi32>
    %101 = arith.sitofp %100 : vector<8x32xi32> to vector<8x32xf32>
    %cst_37 = arith.constant 5.000000e-01 : f32
    %102 = vector.broadcast %cst_37 : f32 to vector<8x32xf32>
    %103 = arith.mulf %91, %102 : vector<8x32xf32>
    %104 = vector.extract_strided_slice %70 {offsets = [16, 0], sizes = [8, 32], strides = [1, 1]} : vector<40x32xf32> to vector<8x32xf32>
    %105 = arith.addf %103, %104 : vector<8x32xf32>
    %cst_38 = arith.constant 7.500000e-01 : f32
    %106 = vector.broadcast %cst_38 : f32 to vector<8x32xf32>
    %107 = arith.mulf %97, %106 : vector<8x32xf32>
    %cst_39 = arith.constant 1.000000e+00 : f32
    %108 = vector.broadcast %cst_39 : f32 to vector<8x32xf32>
    %109 = arith.subf %108, %101 : vector<8x32xf32>
    %110 = arith.mulf %107, %109 : vector<8x32xf32>
    %111 = arith.addf %110, %105 : vector<8x32xf32>
    %cst_40 = arith.constant 5.000000e-01 : f32
    %112 = vector.broadcast %cst_40 : f32 to vector<8x32xf32>
    %113 = arith.cmpf ogt, %111, %112 : vector<8x32xf32>
    %114 = arith.extui %113 : vector<8x32xi1> to vector<8x32xi32>
    %115 = arith.sitofp %114 : vector<8x32xi32> to vector<8x32xf32>
    %cst_41 = arith.constant 5.000000e-01 : f32
    %116 = vector.broadcast %cst_41 : f32 to vector<8x32xf32>
    %117 = arith.mulf %105, %116 : vector<8x32xf32>
    %118 = vector.extract_strided_slice %70 {offsets = [24, 0], sizes = [8, 32], strides = [1, 1]} : vector<40x32xf32> to vector<8x32xf32>
    %119 = arith.addf %117, %118 : vector<8x32xf32>
    %cst_42 = arith.constant 7.500000e-01 : f32
    %120 = vector.broadcast %cst_42 : f32 to vector<8x32xf32>
    %121 = arith.mulf %111, %120 : vector<8x32xf32>
    %cst_43 = arith.constant 1.000000e+00 : f32
    %122 = vector.broadcast %cst_43 : f32 to vector<8x32xf32>
    %123 = arith.subf %122, %115 : vector<8x32xf32>
    %124 = arith.mulf %121, %123 : vector<8x32xf32>
    %125 = arith.addf %124, %119 : vector<8x32xf32>
    %cst_44 = arith.constant 5.000000e-01 : f32
    %126 = vector.broadcast %cst_44 : f32 to vector<8x32xf32>
    %127 = arith.cmpf ogt, %125, %126 : vector<8x32xf32>
    %128 = arith.extui %127 : vector<8x32xi1> to vector<8x32xi32>
    %129 = arith.sitofp %128 : vector<8x32xi32> to vector<8x32xf32>
    %cst_45 = arith.constant 5.000000e-01 : f32
    %130 = vector.broadcast %cst_45 : f32 to vector<8x32xf32>
    %131 = arith.mulf %119, %130 : vector<8x32xf32>
    %132 = vector.extract_strided_slice %70 {offsets = [32, 0], sizes = [8, 32], strides = [1, 1]} : vector<40x32xf32> to vector<8x32xf32>
    %133 = arith.addf %131, %132 : vector<8x32xf32>
    %cst_46 = arith.constant 7.500000e-01 : f32
    %134 = vector.broadcast %cst_46 : f32 to vector<8x32xf32>
    %135 = arith.mulf %125, %134 : vector<8x32xf32>
    %cst_47 = arith.constant 1.000000e+00 : f32
    %136 = vector.broadcast %cst_47 : f32 to vector<8x32xf32>
    %137 = arith.subf %136, %129 : vector<8x32xf32>
    %138 = arith.mulf %135, %137 : vector<8x32xf32>
    %139 = arith.addf %138, %133 : vector<8x32xf32>
    %cst_48 = arith.constant 5.000000e-01 : f32
    %140 = vector.broadcast %cst_48 : f32 to vector<8x32xf32>
    %141 = arith.cmpf ogt, %139, %140 : vector<8x32xf32>
    %142 = arith.extui %141 : vector<8x32xi1> to vector<8x32xi32>
    %143 = arith.sitofp %142 : vector<8x32xi32> to vector<8x32xf32>
    %144 = tpu.concatenate %87, %101, %115, %129, %143 in 0 : vector<8x32xf32>, vector<8x32xf32>, vector<8x32xf32>, vector<8x32xf32>, vector<8x32xf32> -> vector<40x32xf32>
    %145 = arith.truncf %144 : vector<40x32xf32> to vector<40x32xbf16>
    %c0_49 = arith.constant 0 : index
    %c0_50 = arith.constant 0 : index
    %146 = vector.load %arg6[%c0_49, %c0_50] : memref<32x32xbf16, #tpu.memory_space<vmem>>, vector<32x32xbf16>
    %cst_51 = arith.constant dense<0.000000e+00> : vector<40x32xf32>
    %147 = tpu.matmul %145, %146, %cst_51 {dimension_numbers = #tpu.dot_dimension_numbers<[1], [0], [0], [1], [0, 0, 1, 1], [], []>} : vector<40x32xbf16>, vector<32x32xbf16>, vector<40x32xf32> -> vector<40x32xf32>
    %c0_52 = arith.constant 0 : index
    %c0_53 = arith.constant 0 : index
    %148 = vector.load %arg7[%c0_52, %c0_53] : memref<1x32xf32, #tpu.memory_space<vmem>>, vector<1x32xf32>
    %149 = vector.broadcast %148 : vector<1x32xf32> to vector<40x32xf32>
    %150 = arith.addf %147, %149 : vector<40x32xf32>
    %cst_54 = arith.constant 0.000000e+00 : f32
    %151 = vector.broadcast %cst_54 : f32 to vector<8x32xf32>
    %cst_55 = arith.constant 0.000000e+00 : f32
    %152 = vector.broadcast %cst_55 : f32 to vector<8x32xf32>
    %cst_56 = arith.constant 0.000000e+00 : f32
    %153 = vector.broadcast %cst_56 : f32 to vector<8x32xf32>
    %cst_57 = arith.constant 5.000000e-01 : f32
    %154 = vector.broadcast %cst_57 : f32 to vector<8x32xf32>
    %155 = arith.mulf %151, %154 : vector<8x32xf32>
    %156 = vector.extract_strided_slice %150 {offsets = [0, 0], sizes = [8, 32], strides = [1, 1]} : vector<40x32xf32> to vector<8x32xf32>
    %157 = arith.addf %155, %156 : vector<8x32xf32>
    %cst_58 = arith.constant 7.500000e-01 : f32
    %158 = vector.broadcast %cst_58 : f32 to vector<8x32xf32>
    %159 = arith.mulf %152, %158 : vector<8x32xf32>
    %cst_59 = arith.constant 1.000000e+00 : f32
    %160 = vector.broadcast %cst_59 : f32 to vector<8x32xf32>
    %161 = arith.subf %160, %153 : vector<8x32xf32>
    %162 = arith.mulf %159, %161 : vector<8x32xf32>
    %163 = arith.addf %162, %157 : vector<8x32xf32>
    %cst_60 = arith.constant 5.000000e-01 : f32
    %164 = vector.broadcast %cst_60 : f32 to vector<8x32xf32>
    %165 = arith.cmpf ogt, %163, %164 : vector<8x32xf32>
    %166 = arith.extui %165 : vector<8x32xi1> to vector<8x32xi32>
    %167 = arith.sitofp %166 : vector<8x32xi32> to vector<8x32xf32>
    %cst_61 = arith.constant 5.000000e-01 : f32
    %168 = vector.broadcast %cst_61 : f32 to vector<8x32xf32>
    %169 = arith.mulf %157, %168 : vector<8x32xf32>
    %170 = vector.extract_strided_slice %150 {offsets = [8, 0], sizes = [8, 32], strides = [1, 1]} : vector<40x32xf32> to vector<8x32xf32>
    %171 = arith.addf %169, %170 : vector<8x32xf32>
    %cst_62 = arith.constant 7.500000e-01 : f32
    %172 = vector.broadcast %cst_62 : f32 to vector<8x32xf32>
    %173 = arith.mulf %163, %172 : vector<8x32xf32>
    %cst_63 = arith.constant 1.000000e+00 : f32
    %174 = vector.broadcast %cst_63 : f32 to vector<8x32xf32>
    %175 = arith.subf %174, %167 : vector<8x32xf32>
    %176 = arith.mulf %173, %175 : vector<8x32xf32>
    %177 = arith.addf %176, %171 : vector<8x32xf32>
    %cst_64 = arith.constant 5.000000e-01 : f32
    %178 = vector.broadcast %cst_64 : f32 to vector<8x32xf32>
    %179 = arith.cmpf ogt, %177, %178 : vector<8x32xf32>
    %180 = arith.extui %179 : vector<8x32xi1> to vector<8x32xi32>
    %181 = arith.sitofp %180 : vector<8x32xi32> to vector<8x32xf32>
    %cst_65 = arith.constant 5.000000e-01 : f32
    %182 = vector.broadcast %cst_65 : f32 to vector<8x32xf32>
    %183 = arith.mulf %171, %182 : vector<8x32xf32>
    %184 = vector.extract_strided_slice %150 {offsets = [16, 0], sizes = [8, 32], strides = [1, 1]} : vector<40x32xf32> to vector<8x32xf32>
    %185 = arith.addf %183, %184 : vector<8x32xf32>
    %cst_66 = arith.constant 7.500000e-01 : f32
    %186 = vector.broadcast %cst_66 : f32 to vector<8x32xf32>
    %187 = arith.mulf %177, %186 : vector<8x32xf32>
    %cst_67 = arith.constant 1.000000e+00 : f32
    %188 = vector.broadcast %cst_67 : f32 to vector<8x32xf32>
    %189 = arith.subf %188, %181 : vector<8x32xf32>
    %190 = arith.mulf %187, %189 : vector<8x32xf32>
    %191 = arith.addf %190, %185 : vector<8x32xf32>
    %cst_68 = arith.constant 5.000000e-01 : f32
    %192 = vector.broadcast %cst_68 : f32 to vector<8x32xf32>
    %193 = arith.cmpf ogt, %191, %192 : vector<8x32xf32>
    %194 = arith.extui %193 : vector<8x32xi1> to vector<8x32xi32>
    %195 = arith.sitofp %194 : vector<8x32xi32> to vector<8x32xf32>
    %cst_69 = arith.constant 5.000000e-01 : f32
    %196 = vector.broadcast %cst_69 : f32 to vector<8x32xf32>
    %197 = arith.mulf %185, %196 : vector<8x32xf32>
    %198 = vector.extract_strided_slice %150 {offsets = [24, 0], sizes = [8, 32], strides = [1, 1]} : vector<40x32xf32> to vector<8x32xf32>
    %199 = arith.addf %197, %198 : vector<8x32xf32>
    %cst_70 = arith.constant 7.500000e-01 : f32
    %200 = vector.broadcast %cst_70 : f32 to vector<8x32xf32>
    %201 = arith.mulf %191, %200 : vector<8x32xf32>
    %cst_71 = arith.constant 1.000000e+00 : f32
    %202 = vector.broadcast %cst_71 : f32 to vector<8x32xf32>
    %203 = arith.subf %202, %195 : vector<8x32xf32>
    %204 = arith.mulf %201, %203 : vector<8x32xf32>
    %205 = arith.addf %204, %199 : vector<8x32xf32>
    %cst_72 = arith.constant 5.000000e-01 : f32
    %206 = vector.broadcast %cst_72 : f32 to vector<8x32xf32>
    %207 = arith.cmpf ogt, %205, %206 : vector<8x32xf32>
    %208 = arith.extui %207 : vector<8x32xi1> to vector<8x32xi32>
    %209 = arith.sitofp %208 : vector<8x32xi32> to vector<8x32xf32>
    %cst_73 = arith.constant 5.000000e-01 : f32
    %210 = vector.broadcast %cst_73 : f32 to vector<8x32xf32>
    %211 = arith.mulf %199, %210 : vector<8x32xf32>
    %212 = vector.extract_strided_slice %150 {offsets = [32, 0], sizes = [8, 32], strides = [1, 1]} : vector<40x32xf32> to vector<8x32xf32>
    %213 = arith.addf %211, %212 : vector<8x32xf32>
    %cst_74 = arith.constant 7.500000e-01 : f32
    %214 = vector.broadcast %cst_74 : f32 to vector<8x32xf32>
    %215 = arith.mulf %205, %214 : vector<8x32xf32>
    %cst_75 = arith.constant 1.000000e+00 : f32
    %216 = vector.broadcast %cst_75 : f32 to vector<8x32xf32>
    %217 = arith.subf %216, %209 : vector<8x32xf32>
    %218 = arith.mulf %215, %217 : vector<8x32xf32>
    %219 = arith.addf %218, %213 : vector<8x32xf32>
    %cst_76 = arith.constant 5.000000e-01 : f32
    %220 = vector.broadcast %cst_76 : f32 to vector<8x32xf32>
    %221 = arith.cmpf ogt, %219, %220 : vector<8x32xf32>
    %222 = arith.extui %221 : vector<8x32xi1> to vector<8x32xi32>
    %223 = arith.sitofp %222 : vector<8x32xi32> to vector<8x32xf32>
    %224 = tpu.concatenate %167, %181, %195, %209, %223 in 0 : vector<8x32xf32>, vector<8x32xf32>, vector<8x32xf32>, vector<8x32xf32>, vector<8x32xf32> -> vector<40x32xf32>
    %225 = arith.truncf %224 : vector<40x32xf32> to vector<40x32xbf16>
    %c0_77 = arith.constant 0 : index
    %c0_78 = arith.constant 0 : index
    %226 = vector.load %arg8[%c0_77, %c0_78] : memref<32x16xbf16, #tpu.memory_space<vmem>>, vector<32x16xbf16>
    %cst_79 = arith.constant dense<0.000000e+00> : vector<40x16xf32>
    %227 = tpu.matmul %225, %226, %cst_79 {dimension_numbers = #tpu.dot_dimension_numbers<[1], [0], [0], [1], [0, 0, 1, 1], [], []>} : vector<40x32xbf16>, vector<32x16xbf16>, vector<40x16xf32> -> vector<40x16xf32>
    %c0_80 = arith.constant 0 : index
    %c0_81 = arith.constant 0 : index
    %228 = vector.load %arg9[%c0_80, %c0_81] : memref<1x16xf32, #tpu.memory_space<vmem>>, vector<1x16xf32>
    %229 = vector.broadcast %228 : vector<1x16xf32> to vector<40x16xf32>
    %230 = arith.addf %227, %229 : vector<40x16xf32>
    %cst_82 = arith.constant 0.000000e+00 : f32
    %231 = vector.broadcast %cst_82 : f32 to vector<8x16xf32>
    %cst_83 = arith.constant 0.000000e+00 : f32
    %232 = vector.broadcast %cst_83 : f32 to vector<8x16xf32>
    %cst_84 = arith.constant 0.000000e+00 : f32
    %233 = vector.broadcast %cst_84 : f32 to vector<8x16xf32>
    %cst_85 = arith.constant 0.000000e+00 : f32
    %234 = vector.broadcast %cst_85 : f32 to vector<8x16xf32>
    %cst_86 = arith.constant 5.000000e-01 : f32
    %235 = vector.broadcast %cst_86 : f32 to vector<8x16xf32>
    %236 = arith.mulf %231, %235 : vector<8x16xf32>
    %237 = vector.extract_strided_slice %230 {offsets = [0, 0], sizes = [8, 16], strides = [1, 1]} : vector<40x16xf32> to vector<8x16xf32>
    %238 = arith.addf %236, %237 : vector<8x16xf32>
    %cst_87 = arith.constant 7.500000e-01 : f32
    %239 = vector.broadcast %cst_87 : f32 to vector<8x16xf32>
    %240 = arith.mulf %232, %239 : vector<8x16xf32>
    %cst_88 = arith.constant 1.000000e+00 : f32
    %241 = vector.broadcast %cst_88 : f32 to vector<8x16xf32>
    %242 = arith.subf %241, %233 : vector<8x16xf32>
    %243 = arith.mulf %240, %242 : vector<8x16xf32>
    %244 = arith.addf %243, %238 : vector<8x16xf32>
    %cst_89 = arith.constant 5.000000e-01 : f32
    %245 = vector.broadcast %cst_89 : f32 to vector<8x16xf32>
    %246 = arith.cmpf ogt, %244, %245 : vector<8x16xf32>
    %247 = arith.extui %246 : vector<8x16xi1> to vector<8x16xi32>
    %248 = arith.sitofp %247 : vector<8x16xi32> to vector<8x16xf32>
    %249 = arith.addf %234, %248 : vector<8x16xf32>
    %cst_90 = arith.constant 5.000000e-01 : f32
    %250 = vector.broadcast %cst_90 : f32 to vector<8x16xf32>
    %251 = arith.mulf %238, %250 : vector<8x16xf32>
    %252 = vector.extract_strided_slice %230 {offsets = [8, 0], sizes = [8, 16], strides = [1, 1]} : vector<40x16xf32> to vector<8x16xf32>
    %253 = arith.addf %251, %252 : vector<8x16xf32>
    %cst_91 = arith.constant 7.500000e-01 : f32
    %254 = vector.broadcast %cst_91 : f32 to vector<8x16xf32>
    %255 = arith.mulf %244, %254 : vector<8x16xf32>
    %cst_92 = arith.constant 1.000000e+00 : f32
    %256 = vector.broadcast %cst_92 : f32 to vector<8x16xf32>
    %257 = arith.subf %256, %248 : vector<8x16xf32>
    %258 = arith.mulf %255, %257 : vector<8x16xf32>
    %259 = arith.addf %258, %253 : vector<8x16xf32>
    %cst_93 = arith.constant 5.000000e-01 : f32
    %260 = vector.broadcast %cst_93 : f32 to vector<8x16xf32>
    %261 = arith.cmpf ogt, %259, %260 : vector<8x16xf32>
    %262 = arith.extui %261 : vector<8x16xi1> to vector<8x16xi32>
    %263 = arith.sitofp %262 : vector<8x16xi32> to vector<8x16xf32>
    %264 = arith.addf %249, %263 : vector<8x16xf32>
    %cst_94 = arith.constant 5.000000e-01 : f32
    %265 = vector.broadcast %cst_94 : f32 to vector<8x16xf32>
    %266 = arith.mulf %253, %265 : vector<8x16xf32>
    %267 = vector.extract_strided_slice %230 {offsets = [16, 0], sizes = [8, 16], strides = [1, 1]} : vector<40x16xf32> to vector<8x16xf32>
    %268 = arith.addf %266, %267 : vector<8x16xf32>
    %cst_95 = arith.constant 7.500000e-01 : f32
    %269 = vector.broadcast %cst_95 : f32 to vector<8x16xf32>
    %270 = arith.mulf %259, %269 : vector<8x16xf32>
    %cst_96 = arith.constant 1.000000e+00 : f32
    %271 = vector.broadcast %cst_96 : f32 to vector<8x16xf32>
    %272 = arith.subf %271, %263 : vector<8x16xf32>
    %273 = arith.mulf %270, %272 : vector<8x16xf32>
    %274 = arith.addf %273, %268 : vector<8x16xf32>
    %cst_97 = arith.constant 5.000000e-01 : f32
    %275 = vector.broadcast %cst_97 : f32 to vector<8x16xf32>
    %276 = arith.cmpf ogt, %274, %275 : vector<8x16xf32>
    %277 = arith.extui %276 : vector<8x16xi1> to vector<8x16xi32>
    %278 = arith.sitofp %277 : vector<8x16xi32> to vector<8x16xf32>
    %279 = arith.addf %264, %278 : vector<8x16xf32>
    %cst_98 = arith.constant 5.000000e-01 : f32
    %280 = vector.broadcast %cst_98 : f32 to vector<8x16xf32>
    %281 = arith.mulf %268, %280 : vector<8x16xf32>
    %282 = vector.extract_strided_slice %230 {offsets = [24, 0], sizes = [8, 16], strides = [1, 1]} : vector<40x16xf32> to vector<8x16xf32>
    %283 = arith.addf %281, %282 : vector<8x16xf32>
    %cst_99 = arith.constant 7.500000e-01 : f32
    %284 = vector.broadcast %cst_99 : f32 to vector<8x16xf32>
    %285 = arith.mulf %274, %284 : vector<8x16xf32>
    %cst_100 = arith.constant 1.000000e+00 : f32
    %286 = vector.broadcast %cst_100 : f32 to vector<8x16xf32>
    %287 = arith.subf %286, %278 : vector<8x16xf32>
    %288 = arith.mulf %285, %287 : vector<8x16xf32>
    %289 = arith.addf %288, %283 : vector<8x16xf32>
    %cst_101 = arith.constant 5.000000e-01 : f32
    %290 = vector.broadcast %cst_101 : f32 to vector<8x16xf32>
    %291 = arith.cmpf ogt, %289, %290 : vector<8x16xf32>
    %292 = arith.extui %291 : vector<8x16xi1> to vector<8x16xi32>
    %293 = arith.sitofp %292 : vector<8x16xi32> to vector<8x16xf32>
    %294 = arith.addf %279, %293 : vector<8x16xf32>
    %cst_102 = arith.constant 5.000000e-01 : f32
    %295 = vector.broadcast %cst_102 : f32 to vector<8x16xf32>
    %296 = arith.mulf %283, %295 : vector<8x16xf32>
    %297 = vector.extract_strided_slice %230 {offsets = [32, 0], sizes = [8, 16], strides = [1, 1]} : vector<40x16xf32> to vector<8x16xf32>
    %298 = arith.addf %296, %297 : vector<8x16xf32>
    %cst_103 = arith.constant 7.500000e-01 : f32
    %299 = vector.broadcast %cst_103 : f32 to vector<8x16xf32>
    %300 = arith.mulf %289, %299 : vector<8x16xf32>
    %cst_104 = arith.constant 1.000000e+00 : f32
    %301 = vector.broadcast %cst_104 : f32 to vector<8x16xf32>
    %302 = arith.subf %301, %293 : vector<8x16xf32>
    %303 = arith.mulf %300, %302 : vector<8x16xf32>
    %304 = arith.addf %303, %298 : vector<8x16xf32>
    %cst_105 = arith.constant 5.000000e-01 : f32
    %305 = vector.broadcast %cst_105 : f32 to vector<8x16xf32>
    %306 = arith.cmpf ogt, %304, %305 : vector<8x16xf32>
    %307 = arith.extui %306 : vector<8x16xi1> to vector<8x16xi32>
    %308 = arith.sitofp %307 : vector<8x16xi32> to vector<8x16xf32>
    %309 = arith.addf %294, %308 : vector<8x16xf32>
    %310 = arith.truncf %309 : vector<8x16xf32> to vector<8x16xbf16>
    %c0_106 = arith.constant 0 : index
    %c0_107 = arith.constant 0 : index
    %311 = vector.load %arg10[%c0_106, %c0_107] : memref<16x128xbf16, #tpu.memory_space<vmem>>, vector<16x128xbf16>
    %cst_108 = arith.constant dense<0.000000e+00> : vector<8x128xf32>
    %312 = tpu.matmul %310, %311, %cst_108 {dimension_numbers = #tpu.dot_dimension_numbers<[1], [0], [0], [1], [0, 0, 1, 1], [], []>} : vector<8x16xbf16>, vector<16x128xbf16>, vector<8x128xf32> -> vector<8x128xf32>
    %cst_109 = arith.constant 2.000000e-01 : f32
    %313 = vector.broadcast %cst_109 : f32 to vector<8x128xf32>
    %314 = arith.mulf %312, %313 : vector<8x128xf32>
    %c0_110 = arith.constant 0 : index
    %c0_111 = arith.constant 0 : index
    %315 = vector.load %arg11[%c0_110, %c0_111] : memref<1x128xf32, #tpu.memory_space<vmem>>, vector<1x128xf32>
    %316 = vector.broadcast %315 : vector<1x128xf32> to vector<8x128xf32>
    %317 = arith.addf %314, %316 : vector<8x128xf32>
    %318 = math.tanh %317 : vector<8x128xf32>
    %c0_112 = arith.constant 0 : index
    %c0_113 = arith.constant 0 : index
    %319 = vector.load %arg12[%c0_112, %c0_113] : memref<8x128xf32, #tpu.memory_space<vmem>>, vector<8x128xf32>
    tpu.vector_store %arg12[%c0_112, %c0_113], %318 {strides = array<i32>} : memref<8x128xf32, #tpu.memory_space<vmem>>, vector<8x128xf32>,
    return
  }
  func.func @transform_0(%arg0: i32) -> (i32, i32) {
    %c0_i32 = arith.constant 0 : i32
    %c0_i32_0 = arith.constant 0 : i32
    return %arg0, %c0_i32 : i32, i32
  }
  func.func @transform_1(%arg0: i32) -> (i32, i32) {
    %c0_i32 = arith.constant 0 : i32
    %c0_i32_0 = arith.constant 0 : i32
    %c0_i32_1 = arith.constant 0 : i32
    return %c0_i32, %c0_i32_0 : i32, i32
  }
  func.func @transform_2(%arg0: i32) -> (i32, i32) {
    %c0_i32 = arith.constant 0 : i32
    %c0_i32_0 = arith.constant 0 : i32
    %c0_i32_1 = arith.constant 0 : i32
    return %c0_i32, %c0_i32_0 : i32, i32
  }
  func.func @transform_3(%arg0: i32) -> (i32, i32) {
    %c0_i32 = arith.constant 0 : i32
    %c0_i32_0 = arith.constant 0 : i32
    %c0_i32_1 = arith.constant 0 : i32
    return %c0_i32, %c0_i32_0 : i32, i32
  }
  func.func @transform_4(%arg0: i32) -> (i32, i32) {
    %c0_i32 = arith.constant 0 : i32
    %c0_i32_0 = arith.constant 0 : i32
    %c0_i32_1 = arith.constant 0 : i32
    return %c0_i32, %c0_i32_0 : i32, i32
  }
  func.func @transform_5(%arg0: i32) -> (i32, i32) {
    %c0_i32 = arith.constant 0 : i32
    %c0_i32_0 = arith.constant 0 : i32
    %c0_i32_1 = arith.constant 0 : i32
    return %c0_i32, %c0_i32_0 : i32, i32
  }
  func.func @transform_6(%arg0: i32) -> (i32, i32) {
    %c0_i32 = arith.constant 0 : i32
    %c0_i32_0 = arith.constant 0 : i32
    %c0_i32_1 = arith.constant 0 : i32
    return %c0_i32, %c0_i32_0 : i32, i32
  }
  func.func @transform_7(%arg0: i32) -> (i32, i32) {
    %c0_i32 = arith.constant 0 : i32
    %c0_i32_0 = arith.constant 0 : i32
    %c0_i32_1 = arith.constant 0 : i32
    return %c0_i32, %c0_i32_0 : i32, i32
  }
  func.func @transform_8(%arg0: i32) -> (i32, i32) {
    %c0_i32 = arith.constant 0 : i32
    %c0_i32_0 = arith.constant 0 : i32
    %c0_i32_1 = arith.constant 0 : i32
    return %c0_i32, %c0_i32_0 : i32, i32
  }
  func.func @transform_9(%arg0: i32) -> (i32, i32) {
    %c0_i32 = arith.constant 0 : i32
    %c0_i32_0 = arith.constant 0 : i32
    %c0_i32_1 = arith.constant 0 : i32
    return %c0_i32, %c0_i32_0 : i32, i32
  }
  func.func @transform_10(%arg0: i32) -> (i32, i32) {
    %c0_i32 = arith.constant 0 : i32
    %c0_i32_0 = arith.constant 0 : i32
    %c0_i32_1 = arith.constant 0 : i32
    return %c0_i32, %c0_i32_0 : i32, i32
  }
  func.func @transform_11(%arg0: i32) -> (i32, i32) {
    %c0_i32 = arith.constant 0 : i32
    %c0_i32_0 = arith.constant 0 : i32
    return %arg0, %c0_i32 : i32, i32
  }
}

</mosaic_0001>

<bundles_post_ra>
// kernel: tpu_custom_call.1
= control target key start
LH: loop header
LB: loop body
LE: loop exit
PB: predicated region body
PF: predicated region fallthrough
CT: control target
= control target key end

     0   :  { %s1502_s0 = inlined_call_operand.vmem [shape: f32[16,4], index: 0, kind: input, shape index: {}]   ;;  %s1503_s1 = inlined_call_operand.hbm [shape: f32[1,32], index: 1, kind: input, shape index: {}]   ;;  %s1504_s2 = inlined_call_operand.hbm [shape: f32[1,32], index: 2, kind: input, shape index: {}]   ;;  %s1505_s3 = inlined_call_operand.vmem [shape: bf16[32,32], index: 3, kind: input, shape index: {}]   ;;  %s1506_s4 = inlined_call_operand.hbm [shape: f32[1,32], index: 4, kind: input, shape index: {}]   ;;  %s1507_s5 = inlined_call_operand.vmem [shape: bf16[32,32], index: 5, kind: input, shape index: {}]   ;;  %s1508_s6 = inlined_call_operand.vmem [shape: f32[1,32], index: 6, kind: input, shape index: {}]   ;;  %s1509_s7 = inlined_call_operand.vmem [shape: bf16[32,16], index: 7, kind: input, shape index: {}]   ;;  %s1510_s8 = inlined_call_operand.vmem [shape: f32[1,16], index: 8, kind: input, shape index: {}]   ;;  %s1511_s9 = inlined_call_operand.vmem [shape: bf16[16,128], index: 9, kind: input, shape index: {}]   ;;  %s1512_s10 = inlined_call_operand.vmem [shape: f32[1,128], index: 10, kind: input, shape index: {}]   ;;  %s1513_s11 = inlined_call_operand.hbm [shape: f32[16,128], index: 11, kind: output, shape index: {}]  }
   0x1   :  { %1515 = sst [smem:[#allocation15_spill]] %s1504_s2 }
   0x2   :  { %16 = vsyncpa [#allocation4], 0 }
   0x3   :  { %17 = vsyncpa [#allocation7], 0 }
   0x4   :  { %18 = vsyncpa [#allocation5], 0 }
   0x5   :  { %20 = vsyncpa [#allocation5 + $0x1], 0  ;;  %s1330_s17 = smov 0   ;;  %s1332_s18 = smov 0  }
   0x6   :  { %s1334_s19 = smov 0   ;;  %s1336_s20 = smov 0  }
   0x7 LB: > { %1516 = sst [smem:[#allocation13_spill]] %s1256_s19  ;;  %s1351_s21 = sadd.s32 4294967295, %s1260_s20   ;;  %s1260_s20 = sphi %s1336_s20, %s1526_s20   ;;  %s1256_s19 = sphi %s1334_s19, %s1523_s19   ;;  %s1252_s18 = sphi %s1332_s18, %s1525_s18   ;;  %s1248_s17 = sphi %s1330_s17, %s1524_s17  }
   0x8   : > { %s929_s22 = sadd.s32 4294967294, %s1260_s20   ;;  %s1355_s23 = sadd.s32 1, %s1260_s20  }
   0x9   : > { %s269_s24 = sadd.s32 1, %s1256_s19  ;;  %s266_s25 = ssub.s32 %s1260_s20, %s1355_s23 }
   0xa   : > { %p279_p0 = scmp.ne.s32.totalorder %s1256_s19, %s1252_s18  ;;  %p267_p1 = scmp.eq.s32.totalorder %s266_s25, 0 }
   0xb   : > { %p280_p2 = scmp.eq.s32.totalorder %s1351_s21, 1  ;;  %p285_p3 = scmp.ne.s32.totalorder %s1252_s18, %s1248_s17 }
   0xc   : > { %p286_p4 = scmp.eq.s32.totalorder %s929_s22, 1  ;;  %p930_p7 = scmp.ge.s32.totalorder %s1260_s20, 1 }
   0xd   : > { %s1366_s26 = scalar_select %p267_p1, %s1256_s19, %s269_s24  }
   0xe   : > { %p1368_p5 = por %p280_p2, %p279_p0  ;;  %p1372_p6 = por %p286_p4, %p285_p3 }
   0xf   : > { %1517 = sst [smem:[#allocation14_spill]] %s1366_s26  ;;  %p293_p8 = scmp.lt.s32.totalorder %s1260_s20, 3 }
  0x10   : > { %p1038_p9 = scmp.eq.s32.totalorder %s1351_s21, 0  ;;  %s1521_s2 = sld [smem:[#allocation15_spill]] }
  0x11   : > { %p1379_p10 = pnand %p930_p7, %p293_p8  ;;  %s1262_s14 = smov [#allocation6]  }
  0x12   : > { %s319_s15 = sshll.u32 %s1262_s14, 4  ;;  %s305_s24 = sshll.u32 %s1503_s1, 4  ;;  %s320_s15 = int_to_ptr.vmem [resolvable:$true] %s319_s15  ;;  %s306_s24 = int_to_ptr.hbm [resolvable:$true] %s305_s24 }
  0x13   : > { %p1024_p11 = pneg %p1379_p10  ;;  %s332_s19 = sshll.u32 %s1506_s4, 4  ;;  %s333_s19 = int_to_ptr.hbm [resolvable:$true] %s332_s19 }
  0x14   : > { %s1263_s30 = smov [#allocation3]  }
  0x15   : > { %p1025_p12 = pnand %p1038_p9, %p1024_p11  ;;  %s307_s12 = sshll.u32 %s1263_s30, 4  ;;  %s308_s12 = int_to_ptr.vmem [resolvable:$true] %s307_s12 }
  0x16   : > { %s317_s13 = sshll.u32 %s1521_s2, 4  ;;  %s1264_s2 = smov [#allocation8]   ;;  %s318_s13 = int_to_ptr.hbm [resolvable:$true] %s317_s13 }
  0x17   : > { %1030 = dma.hbm_to_vmem [thread:$0]  (!%p1025_p12), %s318_s13, 16, %s320_s15, [#allocation7]  }
  0x18   : > { %1027 = dma.hbm_to_vmem [thread:$0]  (!%p1025_p12), %s306_s24, 16, %s308_s12, [#allocation4]  }
  0x19   : > { %s334_s14 = sshll.u32 %s1264_s2, 4  ;;  %372 = sbr.rel (%p1379_p10) target bundleno = 811 (0x32b), region = 64  ;;  %s335_s14 = int_to_ptr.vmem [resolvable:$true] %s334_s14 }
  0x1a   : > { %1033 = dma.hbm_to_vmem [thread:$0]  (!%p1025_p12), %s333_s19, 16, %s335_s14, [#allocation7]  }
  0x1e   : > { %1235 = dma.done.wait (%p1038_p9), [#allocation4], 16  }
  0x1f   : > { %1237 = vsyncadd (%p1038_p9), [#allocation4], 4294967280 }
  0x20   : > { %1239 = dma.done.wait (%p1038_p9), [#allocation7], 32  }
  0x21   : > { %1241 = vsyncadd (%p1038_p9), [#allocation7], 4294967264  ;;  %p422_p13 = scmp.lt.s32.totalorder %s1351_s21, 1  ;;  %v1265_v0 = vmov 0   ;;  %v1266_v1 = vmov 2   ;;  %v1267_v3 = vmov 1  }
  0x22   : > { %1085 = vset.pattern.permute.xlu0 %v1265_v0  ;;  %1087 = vset.pattern.permute.xlu1 %v1266_v1  ;;  %v1268_v4 = vmov 3   ;;  %v1004_v5 = vld [vmem:[%s1505_s3 + $0x8] sm:$0xff]  ;;  %vm433_vm0 = vcmask 64512   ;;  %v1003_v6 = vld [vmem:[%s1505_s3] sm:$0xff]  ;;  %vm439_vm1 = vcmask 130112   ;;  %vm445_vm2 = vcmask 195712  }
  0x23   : > { %s423_s2 = scalar_select %p422_p13, %s1351_s21, 1  ;;  %534 = vmatpush.bf16.msra.mxu0 %v1004_v5  ;;  %vm451_vm3 = vcmask 261312   ;;  %v1090_v11 = vld [vmem:[#allocation3] ss:$0 sm:$0xff]  ;;  %v1091_v13 = vld [vmem:[#allocation6] ss:$0 sm:$0xff] }
  0x24   : > { %v1269_v19 = vmov 0.0   ;;  %vm518_vm6 = vcmask 261120   ;;  %v1006_v40 = vld [vmem:[%s1507_s5 + $0x8] sm:$0xff]  ;;  %v1005_v41 = vld [vmem:[%s1507_s5] sm:$0xff]  ;;  %s419_s30 = sand.u32 1, %s1252_s18  }
  0x25   : > { %s940_s19 = sshll.u32 %s423_s2, 3  ;;  %630 = vmatpush.bf16.msra.mxu1 %v1006_v40  ;;  %v1092_v42 = vld [vmem:[#allocation8] ss:$0 sm:$0xff]  ;;  %s939_s2 = sshll.u32 %s419_s30, 3 }
  0x26   : > { %s425_s13 = scalar_lea.vmem %s1502_s0, %s940_s19  ;;  %s1000_s19 = sshll.u32 %s1351_s21, 3 }
  0x27   : > { %v427_v2 = vld [vmem:[%s425_s13] sm:$0xff]  ;;  %535 = vmatpush.bf16.msra.mxu0 %v1003_v6  ;;  %s834_s13 = scalar_lea.hbm %s1513_s11, %s1000_s19  ;;  %s421_s15 = scalar_lea.vmem [#allocation9], %s939_s2 }
  0x28   : > { %430 = vperm.xlu0 %1085, %v427_v2   ;;  %442 = vperm.xlu1 %1087, %v427_v2   ;;  %s836_s16 = sshll.u32 %s421_s15, 4  ;;  %s838_s22 = sshll.u32 %s834_s13, 4  ;;  %s837_s16 = int_to_ptr.vmem [resolvable:$true] %s836_s16  ;;  %s839_s22 = int_to_ptr.hbm [resolvable:$true] %s838_s22 }
  0x29   : > { %631 = vmatpush.bf16.msra.mxu1 %v1005_v41  ;;  %s824_s24 = scalar_lea.sflag [#allocation5], %s419_s30  ;;  %s1204_s25 = sshra.s32 %s839_s22, 4  ;;  %s1205_s25 = int_to_ptr.hbm [resolvable:$true] %s1204_s25 }
  0x2a   : > { %s1206_s12 = scalar_lea.hbm %s1205_s25, 8  ;;  %s1210_s19 = scalar_lea.hbm %s1513_s11, 16 }
  0x2b   : > { %p1207_p0 = scmp.ne.s32.totalorder %s1205_s25, %s1206_s12  ;;  %p1211_p3 = scmp.lt.s32.totalorder %s1205_s25, %s1513_s11 }
  0x2c   : > { %p1212_p4 = scmp.lt.s32.totalorder %s1210_s19, %s1206_s12 }
  0x2d   : > { %p1208_p1 = pnand %p1207_p0, %p1368_p5 }
  0x2e   : > { %p1213_p7 = por %p1212_p4, %p1211_p3 }
  0x2f   : > { %p1209_p2 = pneg %p1208_p1 }
  0x30   : > { %1086 = vset.pattern.permute.xlu0 %v1267_v3  ;;  %1088 = vset.pattern.permute.xlu1 %v1268_v4 }
  0x31   : > { %436 = vperm.xlu0 %1086, %v427_v2   ;;  %448 = vperm.xlu1 %1088, %v427_v2   ;;  %p1214_p8 = pnand %p1213_p7, %p1209_p2 }
  0x39   : > { %1089 = vset.pattern.permute.xlu0 %v1268_v4 }
  0x9a   : > { %v431_v7 = vpop.permute.xlu0 %430  ;;  %v443_v8 = vpop.permute.xlu1 %442 }
  0x9b   : > { %434 = vst.msk [vmem:[#allocation2] sm:$0xff] %vm433_vm0, %v431_v7 }
  0xa3   : > { %v437_v9 = vpop.permute.xlu0 %436  ;;  %v449_v10 = vpop.permute.xlu1 %448 }
  0xa4   : > { %440 = vst.msk [vmem:[#allocation2] sm:$0xff] %vm439_vm1, %v437_v9 }
  0xa5   : > { %446 = vst.msk [vmem:[#allocation2] sm:$0xff] %vm445_vm2, %v443_v8 }
  0xa6   : > { %452 = vst.msk [vmem:[#allocation2] sm:$0xff] %vm451_vm3, %v449_v10 }
  0xad   : > { %v453_v12 = vld [vmem:[#allocation2] sm:$0xff] }
  0xae   : > { %v458_v14 = vsub.f32 %v453_v12, %v1090_v11 }
  0xb0   : > { %v459_v15 = vmul.f32 %v458_v14, %v458_v14 }
  0xb2   : > { %v464_v16 = vmul.f32 %v1091_v13, %v459_v15 }
  0xb4   : > { %v465_v17 = vmul.f32 1.442695, %v464_v16 }
  0xb6   : > { %1096 = vpow2.f32 %v465_v17 }
  0xbc   : > { %v1097_v18 = vpop.eup %1096 }
  0xbd   : > { %vm468_vm4 = vcmp.gt.f32.partialorder %v1097_v18, 0.999 }
  0xbe   : > { %v941_v20 = vsel %vm468_vm4, 1.0, %v1269_v19 }
  0xbf   : > { %v471_v21 = vmul.f32 0.999, %v941_v20 }
  0xc1   : > { %v472_v22 = vsub.f32 %v1097_v18, %v471_v21 }
  0xc3   : > { %v473_v23 = vadd.f32 %v1097_v18, %v472_v22 }
  0xc5   : > { %vm474_vm5 = vcmp.gt.f32.partialorder %v473_v23, 0.999 }
  0xc6   : > { %v942_v24 = vsel %vm474_vm5, 1.0, %v1269_v19 }
  0xc7   : > { %v477_v25 = vmul.f32 0.999, %v942_v24  ;;  %v495_v26 = vpack.c.bf16 %v942_v24, %v941_v20  ;;  %v1007_v24 = vld [vmem:[%s1509_s7] sm:$0xff] }
  0xc9   : > { %v478_v27 = vsub.f32 %v473_v23, %v477_v25  ;;  %954 = vmatmul.msk.bf16.vlgmr.msra.gmra.mxu0 %vm518_vm6, %v495_v26  ;;  %v1008_v23 = vld [vmem:[%s1509_s7 + $0x8] sm:$0xff]  ;;  %v1093_v25 = vld [vmem:[%s1508_s6] ss:$0 sm:$0xff] }
  0xca   : > { %726 = vmatpush.bf16.msra.mxu2 %v1008_v23 }
  0xcb   : > { %v479_v28 = vadd.f32 %v1097_v18, %v478_v27 }
  0xcd   : > { %vm480_vm7 = vcmp.gt.f32.partialorder %v479_v28, 0.999 }
  0xce   : > { %v943_v29 = vsel %vm480_vm7, 1.0, %v1269_v19  ;;  %727 = vmatpush.bf16.msra.mxu2 %v1007_v24 }
  0xcf   : > { %v483_v30 = vmul.f32 0.999, %v943_v29 }
  0xd1   : > { %v484_v31 = vsub.f32 %v479_v28, %v483_v30 }
  0xd3   : > { %v485_v32 = vadd.f32 %v1097_v18, %v484_v31 }
  0xd5   : > { %vm486_vm8 = vcmp.gt.f32.partialorder %v485_v32, 0.999 }
  0xd6   : > { %v944_v33 = vsel %vm486_vm8, 1.0, %v1269_v19 }
  0xd7   : > { %v489_v34 = vmul.f32 0.999, %v944_v33  ;;  %v496_v35 = vpack.c.bf16 %v944_v33, %v943_v29 }
  0xd9   : > { %955 = vmatmul.msk.bf16.gmra.mxu0 %vm518_vm6, %v496_v35  ;;  %v490_v36 = vsub.f32 %v485_v32, %v489_v34 }
  0xdb   : > { %v491_v37 = vadd.f32 %v1097_v18, %v490_v36 }
  0xdd   : > { %vm492_vm9 = vcmp.gt.f32.partialorder %v491_v37, 0.999 }
  0xde   : > { %v945_v38 = vsel %vm492_vm9, 1.0, %v1269_v19  ;;  %vm798_vm9 = vcmask 130048  }
  0xdf   : > { %v497_v39 = vpack.c.bf16 %v945_v38, %v945_v38 }
  0xe9   : > { %956 = vmatmul.msk.bf16.gmra.mxu0 %vm518_vm6, %v497_v39 }
 0x146   : > { %v537_v43 = vpop.f32.mrf.mxu0 }
 0x147   : > { %v538_v44 = vadd.f32 %v1092_v42, %v537_v43 }
 0x149   : > { %vm553_vm10 = vcmp.gt.f32.partialorder %v538_v44, 0.5  ;;  %v558_v48 = vmul.f32 0.75, %v538_v44  ;;  %v556_v50 = vmul.f32 0.5, %v538_v44 }
 0x14a   : > { %v957_v45 = vsel %vm553_vm10, 1.0, %v1269_v19 }
 0x14b   : > { %v559_v46 = vsub.f32 1.0, %v957_v45 }
 0x14d   : > { %v560_v52 = vmul.f32 %v559_v46, %v558_v48 }
 0x14e   : > { %v539_v47 = vpop.f32.mrf.mxu0 }
 0x14f   : > { %v540_v49 = vadd.f32 %v1092_v42, %v539_v47 }
 0x151   : > { %v557_v51 = vadd.f32 %v556_v50, %v540_v49 }
 0x153   : > { %v561_v53 = vadd.f32 %v560_v52, %v557_v51  ;;  %v565_v56 = vmul.f32 0.5, %v557_v51 }
 0x155   : > { %vm562_vm11 = vcmp.gt.f32.partialorder %v561_v53, 0.5  ;;  %v567_v57 = vmul.f32 0.75, %v561_v53 }
 0x156   : > { %v958_v54 = vsel %vm562_vm11, 1.0, %v1269_v19  ;;  %v542_v55 = vpop.f32.mrf.mxu0 }
 0x157   : > { %v543_v58 = vadd.f32 %v1092_v42, %v542_v55  ;;  %v568_v59 = vsub.f32 1.0, %v958_v54  ;;  %v592_v60 = vpack.c.bf16 %v958_v54, %v957_v45 }
 0x159   : > { %v566_v61 = vadd.f32 %v565_v56, %v543_v58  ;;  %v569_v62 = vmul.f32 %v568_v59, %v567_v57  ;;  %970 = vmatmul.msk.bf16.vlgmr.msra.gmra.mxu1 %vm518_vm6, %v592_v60 }
 0x15b   : > { %v570_v63 = vadd.f32 %v569_v62, %v566_v61  ;;  %v574_v4 = vmul.f32 0.5, %v566_v61 }
 0x15d   : > { %vm571_vm12 = vcmp.gt.f32.partialorder %v570_v63, 0.5  ;;  %v576_v2 = vmul.f32 0.75, %v570_v63 }
 0x15e   : > { %v959_v0 = vsel %vm571_vm12, 1.0, %v1269_v19  ;;  %v544_v1 = vpop.f32.mrf.mxu0 }
 0x15f   : > { %v545_v3 = vadd.f32 %v1092_v42, %v544_v1  ;;  %v577_v5 = vsub.f32 1.0, %v959_v0 }
 0x161   : > { %v575_v6 = vadd.f32 %v574_v4, %v545_v3  ;;  %v578_v7 = vmul.f32 %v577_v5, %v576_v2  ;;  %v1094_v5 = vld [vmem:[%s1510_s8] ss:$0 sm:$0xff] }
 0x163   : > { %v579_v8 = vadd.f32 %v578_v7, %v575_v6  ;;  %v583_v11 = vmul.f32 0.5, %v575_v6 }
 0x165   : > { %vm580_vm13 = vcmp.gt.f32.partialorder %v579_v8, 0.5  ;;  %v585_v12 = vmul.f32 0.75, %v579_v8 }
 0x166   : > { %v960_v9 = vsel %vm580_vm13, 1.0, %v1269_v19  ;;  %v547_v10 = vpop.f32.mrf.mxu0 }
 0x167   : > { %v548_v13 = vadd.f32 %v1092_v42, %v547_v10  ;;  %v586_v14 = vsub.f32 1.0, %v960_v9  ;;  %v593_v15 = vpack.c.bf16 %v960_v9, %v959_v0 }
 0x169   : > { %v584_v16 = vadd.f32 %v583_v11, %v548_v13  ;;  %v587_v17 = vmul.f32 %v586_v14, %v585_v12  ;;  %971 = vmatmul.msk.bf16.gmra.mxu1 %vm518_vm6, %v593_v15  ;;  %v1009_v11 = vld [vmem:[%s1511_s9] sm:$0xff] }
 0x16a   : > { %809 = vmatpush.bf16.msra.mxu3 %v1009_v11 }
 0x16b   : > { %v588_v18 = vadd.f32 %v587_v17, %v584_v16 }
 0x16d   : > { %vm589_vm14 = vcmp.gt.f32.partialorder %v588_v18, 0.5 }
 0x16e   : > { %v549_v20 = vpop.f32.mrf.mxu0  ;;  %v961_v21 = vsel %vm589_vm14, 1.0, %v1269_v19 }
 0x16f   : > { %v594_v22 = vpack.c.bf16 %v961_v21, %v961_v21 }
 0x179   : > { %972 = vmatmul.msk.bf16.gmra.mxu1 %vm518_vm6, %v594_v22 }
 0x1d6   : > { %v633_v26 = vpop.f32.mrf.mxu1 }
 0x1d7   : > { %v634_v27 = vadd.f32 %v1093_v25, %v633_v26 }
 0x1d9   : > { %vm649_vm15 = vcmp.gt.f32.partialorder %v634_v27, 0.5  ;;  %v654_v31 = vmul.f32 0.75, %v634_v27  ;;  %v652_v33 = vmul.f32 0.5, %v634_v27 }
 0x1da   : > { %v973_v28 = vsel %vm649_vm15, 1.0, %v1269_v19 }
 0x1db   : > { %v655_v29 = vsub.f32 1.0, %v973_v28 }
 0x1dd   : > { %v656_v35 = vmul.f32 %v655_v29, %v654_v31 }
 0x1de   : > { %v635_v30 = vpop.f32.mrf.mxu1 }
 0x1df   : > { %v636_v32 = vadd.f32 %v1093_v25, %v635_v30 }
 0x1e1   : > { %v653_v34 = vadd.f32 %v652_v33, %v636_v32 }
 0x1e3   : > { %v657_v36 = vadd.f32 %v656_v35, %v653_v34  ;;  %v661_v39 = vmul.f32 0.5, %v653_v34 }
 0x1e5   : > { %vm658_vm0 = vcmp.gt.f32.partialorder %v657_v36, 0.5  ;;  %v663_v40 = vmul.f32 0.75, %v657_v36 }
 0x1e6   : > { %v974_v37 = vsel %vm658_vm0, 1.0, %v1269_v19  ;;  %v638_v38 = vpop.f32.mrf.mxu1 }
 0x1e7   : > { %v639_v41 = vadd.f32 %v1093_v25, %v638_v38  ;;  %v664_v42 = vsub.f32 1.0, %v974_v37  ;;  %v688_v43 = vpack.c.bf16 %v974_v37, %v973_v28 }
 0x1e9   : > { %v662_v44 = vadd.f32 %v661_v39, %v639_v41  ;;  %v665_v45 = vmul.f32 %v664_v42, %v663_v40  ;;  %986 = vmatmul.msk.bf16.vlgmr.msra.gmra.mxu2 %vm518_vm6, %v688_v43 }
 0x1eb   : > { %v666_v46 = vadd.f32 %v665_v45, %v662_v44  ;;  %v670_v51 = vmul.f32 0.5, %v662_v44 }
 0x1ed   : > { %vm667_vm1 = vcmp.gt.f32.partialorder %v666_v46, 0.5  ;;  %v672_v49 = vmul.f32 0.75, %v666_v46 }
 0x1ee   : > { %v975_v47 = vsel %vm667_vm1, 1.0, %v1269_v19  ;;  %v640_v48 = vpop.f32.mrf.mxu1 }
 0x1ef   : > { %v641_v50 = vadd.f32 %v1093_v25, %v640_v48  ;;  %v673_v52 = vsub.f32 1.0, %v975_v47 }
 0x1f1   : > { %v671_v53 = vadd.f32 %v670_v51, %v641_v50  ;;  %v674_v54 = vmul.f32 %v673_v52, %v672_v49 }
 0x1f3   : > { %v675_v55 = vadd.f32 %v674_v54, %v671_v53  ;;  %v679_v58 = vmul.f32 0.5, %v671_v53  ;;  %v1095_v53 = vld [vmem:[%s1512_s10] ss:$0 sm:$0xff] }
 0x1f5   : > { %vm676_vm2 = vcmp.gt.f32.partialorder %v675_v55, 0.5  ;;  %v681_v59 = vmul.f32 0.75, %v675_v55 }
 0x1f6   : > { %v976_v56 = vsel %vm676_vm2, 1.0, %v1269_v19  ;;  %v643_v57 = vpop.f32.mrf.mxu1 }
 0x1f7   : > { %v644_v60 = vadd.f32 %v1093_v25, %v643_v57  ;;  %v682_v61 = vsub.f32 1.0, %v976_v56  ;;  %v689_v62 = vpack.c.bf16 %v976_v56, %v975_v47 }
 0x1f9   : > { %v680_v63 = vadd.f32 %v679_v58, %v644_v60  ;;  %v683_v0 = vmul.f32 %v682_v61, %v681_v59  ;;  %987 = vmatmul.msk.bf16.gmra.mxu2 %vm518_vm6, %v689_v62 }
 0x1fb   : > { %v684_v1 = vadd.f32 %v683_v0, %v680_v63 }
 0x1fd   : > { %vm685_vm3 = vcmp.gt.f32.partialorder %v684_v1, 0.5 }
 0x1fe   : > { %v645_v2 = vpop.f32.mrf.mxu1  ;;  %v977_v3 = vsel %vm685_vm3, 1.0, %v1269_v19 }
 0x1ff   : > { %v690_v4 = vpack.c.bf16 %v977_v3, %v977_v3 }
 0x209   : > { %988 = vmatmul.msk.bf16.gmra.mxu2 %vm518_vm6, %v690_v4 }
 0x26c   : > { %v729_v6 = vpop.f32.mrf.mxu2 }
 0x26d   : > { %v730_v7 = vadd.f32 %v1094_v5, %v729_v6 }
 0x26f   : > { %vm745_vm4 = vcmp.gt.f32.partialorder %v730_v7, 0.5  ;;  %v751_v12 = vmul.f32 0.75, %v730_v7  ;;  %v749_v14 = vmul.f32 0.5, %v730_v7 }
 0x270   : > { %v989_v8 = vsel %vm745_vm4, 1.0, %v1269_v19 }
 0x271   : > { %v752_v9 = vsub.f32 1.0, %v989_v8 }
 0x273   : > { %v753_v16 = vmul.f32 %v752_v9, %v751_v12 }
 0x274   : > { %v731_v10 = vpop.f32.mrf.mxu2 }
 0x275   : > { %v732_v13 = vadd.f32 %v1094_v5, %v731_v10 }
 0x277   : > { %v750_v15 = vadd.f32 %v749_v14, %v732_v13 }
 0x279   : > { %v754_v17 = vadd.f32 %v753_v16, %v750_v15  ;;  %v759_v23 = vmul.f32 0.5, %v750_v15 }
 0x27b   : > { %vm755_vm5 = vcmp.gt.f32.partialorder %v754_v17, 0.5  ;;  %v761_v21 = vmul.f32 0.75, %v754_v17 }
 0x27c   : > { %v990_v18 = vsel %vm755_vm5, 1.0, %v1269_v19  ;;  %v734_v20 = vpop.f32.mrf.mxu2 }
 0x27d   : > { %v735_v22 = vadd.f32 %v1094_v5, %v734_v20  ;;  %v762_v24 = vsub.f32 1.0, %v990_v18  ;;  %v758_v43 = vadd.f32 %v990_v18, %v989_v8 }
 0x27f   : > { %v760_v25 = vadd.f32 %v759_v23, %v735_v22  ;;  %v763_v26 = vmul.f32 %v762_v24, %v761_v21 }
 0x281   : > { %v764_v27 = vadd.f32 %v763_v26, %v760_v25  ;;  %v769_v32 = vmul.f32 0.5, %v760_v25 }
 0x283   : > { %vm765_vm6 = vcmp.gt.f32.partialorder %v764_v27, 0.5  ;;  %v771_v30 = vmul.f32 0.75, %v764_v27 }
 0x284   : > { %v991_v28 = vsel %vm765_vm6, 1.0, %v1269_v19  ;;  %v736_v29 = vpop.f32.mrf.mxu2 }
 0x285   : > { %v737_v31 = vadd.f32 %v1094_v5, %v736_v29  ;;  %v772_v33 = vsub.f32 1.0, %v991_v28  ;;  %v768_v47 = vadd.f32 %v991_v28, %v758_v43 }
 0x287   : > { %v770_v34 = vadd.f32 %v769_v32, %v737_v31  ;;  %v773_v35 = vmul.f32 %v772_v33, %v771_v30 }
 0x289   : > { %v774_v36 = vadd.f32 %v773_v35, %v770_v34  ;;  %v779_v41 = vmul.f32 0.5, %v770_v34 }
 0x28b   : > { %vm775_vm7 = vcmp.gt.f32.partialorder %v774_v36, 0.5  ;;  %v781_v39 = vmul.f32 0.75, %v774_v36 }
 0x28c   : > { %v992_v37 = vsel %vm775_vm7, 1.0, %v1269_v19  ;;  %v739_v38 = vpop.f32.mrf.mxu2 }
 0x28d   : > { %v740_v40 = vadd.f32 %v1094_v5, %v739_v38  ;;  %v782_v42 = vsub.f32 1.0, %v992_v37  ;;  %v778_v48 = vadd.f32 %v992_v37, %v768_v47 }
 0x28f   : > { %v780_v44 = vadd.f32 %v779_v41, %v740_v40  ;;  %v783_v45 = vmul.f32 %v782_v42, %v781_v39 }
 0x291   : > { %v784_v46 = vadd.f32 %v783_v45, %v780_v44 }
 0x293   : > { %vm785_vm8 = vcmp.gt.f32.partialorder %v784_v46, 0.5 }
 0x294   : > { %v741_v49 = vpop.f32.mrf.mxu2  ;;  %v993_v50 = vsel %vm785_vm8, 1.0, %v1269_v19 }
 0x295   : > { %v788_v51 = vadd.f32 %v993_v50, %v778_v48 }
 0x297   : > { %v789_v52 = vpack.c.bf16 %v788_v51, %v788_v51 }
 0x299   : > { %998 = vmatmul.msk.bf16.vlgmr.msra.gmra.mxu3 %vm798_vm9, %v789_v52 }
 0x31c   : > { %v811_v54 = vpop.f32.mrf.mxu3 }
 0x31d   : > { %v815_v55 = vmul.f32 0.2, %v811_v54 }
 0x31f   : > { %v820_v56 = vadd.f32 %v1095_v53, %v815_v55 }
 0x321   : > { %1098 = vtanh.f32 %v820_v56 }
 0x324   : > { %v813_v19 = vpop.f32.mrf.mxu3 }
 0x327   : > { %v1099_v57 = vpop.eup %1098 }
 0x328   : > { %822 = vst [vmem:[%s421_s15] sm:$0xff] %v1099_v57 }
 0x329   : > { %1217 = shalt.err (!%p1214_p8)
}
 0x32a   : > { %1022 = dma.vmem_to_hbm [thread:$0]  (%p1368_p5), %s837_s16, 128, %s839_s22, %s824_s24  }
 0x32b PF: > { %p1044_p9 = scmp.ge.s32.totalorder %s1260_s20, 2  ;;  %s850_s30 = sand.u32 1, %s1248_s17  }
 0x32c   : > { %s851_s29 = scalar_lea.sflag [#allocation5], %s850_s30 }
 0x32d   : > { %p1035_p10 = pnand %p1044_p9, %p1372_p6 }
 0x32f   : > { %p1036_p11 = pneg %p1035_p10 }
 0x331   : > { %1243 = dma.done.wait (%p1036_p11), %s851_s29, 128  }
 0x332   : > { %1245 = vsyncadd (%p1036_p11), %s851_s29, 4294967168  ;;  %s1522_s13 = sld [smem:[#allocation13_spill]]  ;;  %p23_p12 = scmp.ge.s32.totalorder %s1355_s23, 4  }
 0x333   : > { %s1523_s19 = sld [smem:[#allocation14_spill]]  ;;  %s1524_s17 = smov %s1252_s18 }
 0x334   : > { %s1526_s20 = smov %s1355_s23  ;;  %25 = sbr.rel (!%p23_p12) target bundleno = 7 (0x7), region = 112 }
 0x338   : > { %s1525_s18 = smov %s1522_s13 }
 0x339   :  { %857 = vsyncpa [#allocation4], 1 }
 0x33a   :  { %859 = vsyncpa [#allocation4 + $0x1], 1 }
 0x33b   :  { %860 = vsyncpa [#allocation7], 1 }
 0x33c   :  { %861 = vsyncpa [#allocation5], 1 }
 0x33d   :  { %863 = vsyncpa [#allocation5 + $0x1], 1 }

</bundles_post_ra>
